<compile_context>
chip_gen: v5e
topology: v5e:2x2
jax: 0.10.0
libtpu: 0.0.40
codegen_flags: <defaults>
</compile_context>

<pallas_src>
import functools

import jax
import jax.numpy as jnp
from jax.experimental import pallas as pl
from jax.experimental.pallas import tpu as pltpu

LEAKY_SLOPE = 0.01   # nn.LeakyReLU() default negative_slope
BN_EPS = 1e-5        # nn.BatchNorm2d default eps


def fused_conv_block_kernel(x_ref, w1_ref, b1_ref, w2_ref, b2_ref, mask_ref,
                            out_ref, xpad_ref, x1pad_ref, patch1_ref, patch2_ref,
                            *, H, W):
    """Shapes (per grid step):
       x_ref:      (1, Cin, H*W)       flattened NCHW input tile (lane-dense)
       w1_ref:     (Cout, 9*Cin)       BN-folded im2col weight slab, conv1
       b1_ref:     (Cout, 1)           BN-folded bias, conv1
       w2_ref:     (Cout, 9*Cout)      BN-folded im2col weight slab, conv2
       b2_ref:     (Cout, 1)           BN-folded bias, conv2
       mask_ref:   (1, H*Wp)           1.0 on real columns, 0.0 on junk columns
       out_ref:    (1, Cout, H*Wp)     wide output (junk columns stripped on host)
       xpad_ref:   (Cin,  Hp*Wp + 2)   flat zero-padded input scratch
       x1pad_ref:  (Cout, Hp*Wp + 2)   flat zero-padded x1 scratch
       patch*_ref: (9*C,  H*Wp)        im2col patch scratch (conv1 / conv2)
    """
    cin = x_ref.shape[1]
    cout = out_ref.shape[1]
    Wp = W + 2
    NW = H * Wp

    # ---- build the zero-padded input entirely in VMEM (no host jnp.pad) ----
    xpad_ref[...] = jnp.zeros_like(xpad_ref)
    x1pad_ref[...] = jnp.zeros_like(x1pad_ref)
    for h in range(H):                           # static, unrolled; tiny rows
        dst = (h + 1) * Wp + 1
        src = h * W                              # 16-aligned lane offset
        xpad_ref[:, dst:dst + W] = x_ref[0, :, src:src + W]

    def conv3x3_bn_lrelu(src_ref, patch_ref, C, w_ref, b_ref):
        # im2col patch from 9 overlapping lane slices of the flat padded image,
        # then one lane-dense MXU matmul: (Cout, 9C) @ (9C, H*Wp).
        for dy in range(3):
            for dx in range(3):
                t = dy * 3 + dx
                s = dy * Wp + dx
                patch_ref[t * C:(t + 1) * C, :] = src_ref[:, s:s + NW]
        y = jnp.dot(w_ref[...], patch_ref[...],
                    preferred_element_type=jnp.float32)          # (Cout, NW)
        y = y + b_ref[...]                                       # bias (Cout, 1)
        return jnp.where(y > 0.0, y, LEAKY_SLOPE * y)            # LeakyReLU

    # conv1 -> BN -> LeakyReLU  (Dropout in eval mode is the identity)
    y1 = conv3x3_bn_lrelu(xpad_ref, patch1_ref, cin, w1_ref, b1_ref)

    # Re-pad x1 in VMEM: the junk columns of the wide layout land exactly on the
    # left/right zero-padding positions, so masking them to 0 re-pads for free.
    x1pad_ref[:, Wp + 1:Wp + 1 + NW] = y1 * mask_ref[...]

    # conv2 -> BN -> LeakyReLU
    y2 = conv3x3_bn_lrelu(x1pad_ref, patch2_ref, cout, w2_ref, b2_ref)

    # residual: x1 + x2 (junk columns carry garbage; stripped host-side)
    out_ref[0] = y1 + y2


def fuse_conv_bn(w, b, gamma, beta, running_mean, running_var):
    """Fold eval-mode BatchNorm into conv weight/bias.

    w: (3, 3, Cin, Cout)  (NOTE: real PyTorch weights are (Cout, Cin, kH, kW)
    and must be transposed to (kH, kW, Cin, Cout) first.)
    Returns fused (3, 3, Cin, Cout) weight and (Cout,) bias.
    """
    scale = gamma / jnp.sqrt(running_var + BN_EPS)               # (Cout,)
    w_fused = w * scale[None, None, None, :]
    b_fused = (b - running_mean) * scale + beta
    return w_fused, b_fused


def _pack_for_kernel(w_fused, b_fused):
    """Lay the fused weight out as an im2col slab (Cout, 9*Cin) with column
    order (dy, dx, cin) matching the kernel's patch rows; bias as (Cout, 1)."""
    cout = w_fused.shape[-1]
    w_slab = jnp.transpose(w_fused, (3, 0, 1, 2)).reshape(cout, -1)
    return w_slab, b_fused[:, None]


def my_conv_block_forward(x_nchw, params):
    """Forward pass of MyConvBlock (inference). x_nchw: (B, Cin, H, W) float32."""
    (w1f, b1f), (w2f, b2f) = params
    w1, b1 = _pack_for_kernel(w1f, b1f)
    w2, b2 = _pack_for_kernel(w2f, b2f)

    B, Cin, H, W = x_nchw.shape
    Cout = w1.shape[0]
    Wp = W + 2
    NW = H * Wp
    HW = H * W
    FLAT = (H + 2) * Wp + 2     # +2: the (dy=2, dx=2) wide slice overruns by 2

    # Lane-dense input block: free reshape of contiguous NCHW.
    x_flat = x_nchw.reshape(B, Cin, HW)

    # 1.0 on columns that correspond to real pixels (w < W), 0.0 on the 2 junk
    # columns per image row produced by the overlapped wide slices.
    mask = ((jnp.arange(NW) % Wp) < W).astype(jnp.float32)[None, :]

    kernel = functools.partial(fused_conv_block_kernel, H=H, W=W)

    out_wide = pl.pallas_call(
        kernel,
        out_shape=jax.ShapeDtypeStruct((B, Cout, NW), jnp.float32),
        grid=(B,),
        in_specs=[
            pl.BlockSpec((1, Cin, HW), lambda b: (b, 0, 0)),        # x (flat NCHW)
            pl.BlockSpec((Cout, 9 * Cin), lambda b: (0, 0)),        # w1 slab
            pl.BlockSpec((Cout, 1), lambda b: (0, 0)),              # b1
            pl.BlockSpec((Cout, 9 * Cout), lambda b: (0, 0)),       # w2 slab
            pl.BlockSpec((Cout, 1), lambda b: (0, 0)),              # b2
            pl.BlockSpec((1, NW), lambda b: (0, 0)),                # valid mask
        ],
        out_specs=pl.BlockSpec((1, Cout, NW), lambda b: (b, 0, 0)),
        scratch_shapes=[
            pltpu.VMEM((Cin, FLAT), jnp.float32),       # flat padded input
            pltpu.VMEM((Cout, FLAT), jnp.float32),      # flat padded x1
            pltpu.VMEM((9 * Cin, NW), jnp.float32),     # im2col patch, conv1
            pltpu.VMEM((9 * Cout, NW), jnp.float32),    # im2col patch, conv2
        ],
        compiler_params=pltpu.CompilerParams(
            dimension_semantics=("parallel",),
            vmem_limit_bytes=32 * 1024 * 1024,
        ),
    )(x_flat, w1, b1, w2, b2, mask)

    # Strip the 2 junk columns per row: (B, Cout, H*Wp) -> (B, Cout, H, W).
    return out_wide.reshape(B, Cout, H, Wp)[:, :, :, :W]


def reference_forward(x, params):
    """Pure-JAX reference (fused BN weights, eval-mode dropout)."""
    (w1, b1), (w2, b2) = params
    dn = ("NCHW", "HWIO", "NCHW")

    def layer(inp, w, b):
        y = jax.lax.conv_general_dilated(inp, w, (1, 1), "SAME",
                                         dimension_numbers=dn)
        y = y + b[None, :, None, None]
        return jnp.where(y > 0.0, y, LEAKY_SLOPE * y)

    x1 = layer(x, w1, b1)
    x2 = layer(x1, w2, b2)
    return x1 + x2


def init_params(key, in_channels, out_channels):
    """Deterministic synthetic parameters matching MyConvBlock.__init__ shapes."""
    ks = jax.random.split(key, 8)

    def conv_params(kw, kb, cin, cout):
        fan_in = cin * 9
        bound = 1.0 / jnp.sqrt(fan_in)
        w = jax.random.uniform(kw, (3, 3, cin, cout), jnp.float32, -bound, bound)
        b = jax.random.uniform(kb, (cout,), jnp.float32, -bound, bound)
        return w, b

    def bn_params(kg, kb, cout):
        gamma = 1.0 + 0.1 * jax.random.normal(kg, (cout,), jnp.float32)
        beta = 0.1 * jax.random.normal(kb, (cout,), jnp.float32)
        running_mean = jnp.zeros((cout,), jnp.float32)
        running_var = jnp.ones((cout,), jnp.float32)
        return gamma, beta, running_mean, running_var

    w1, b1 = conv_params(ks[0], ks[1], in_channels, out_channels)
    g1, be1, rm1, rv1 = bn_params(ks[2], ks[3], out_channels)
    w2, b2 = conv_params(ks[4], ks[5], out_channels, out_channels)
    g2, be2, rm2, rv2 = bn_params(ks[6], ks[7], out_channels)

    return (fuse_conv_bn(w1, b1, g1, be1, rm1, rv1),
            fuse_conv_bn(w2, b2, g2, be2, rm2, rv2))


if __name__ == "__main__":
    key = jax.random.PRNGKey(0)
    kx, kp = jax.random.split(key)

    B, Cin, Cout, H, W = 2, 4, 8, 16, 16
    dropout_p = 0.1  # eval-mode Dropout => identity

    x = jax.random.normal(kx, (B, Cin, H, W), jnp.float32)
    params = init_params(kp, Cin, Cout)

    out = jax.jit(my_conv_block_forward)(x, params)
    out = jax.block_until_ready(out)
    assert out.shape == (B, Cout, H, W), out.shape

    ref = reference_forward(x, params)
    assert bool(jnp.allclose(out, ref, atol=1e-3, rtol=1e-3)), (
        float(jnp.max(jnp.abs(out - ref))))

    print("KERNEL_OK")
</pallas_src>

<mosaic_0001>
module attributes {stable_mosaic.version = 11 : i64} {
  func.func @fused_conv_block_kernel(%arg0: i32, %arg1: memref<1x4x256xf32, #tpu.memory_space<vmem>>, %arg2: memref<8x36xf32, #tpu.memory_space<vmem>>, %arg3: memref<8x1xf32, #tpu.memory_space<vmem>>, %arg4: memref<8x72xf32, #tpu.memory_space<vmem>>, %arg5: memref<8x1xf32, #tpu.memory_space<vmem>>, %arg6: memref<1x288xf32, #tpu.memory_space<vmem>>, %arg7: memref<1x8x288xf32, #tpu.memory_space<vmem>>, %arg8: memref<4x326xf32, #tpu.memory_space<vmem>>, %arg9: memref<8x326xf32, #tpu.memory_space<vmem>>, %arg10: memref<36x288xf32, #tpu.memory_space<vmem>>, %arg11: memref<72x288xf32, #tpu.memory_space<vmem>>) attributes {dimension_semantics = [#tpu.dimension_semantics<parallel>], iteration_bounds = array<i64: 2>, scalar_prefetch = 0 : i64, scratch_operands = 4 : i64, tpu.core_type = #tpu.core_type<tc>, window_params = [{transform_indices = @transform_0, window_bounds = array<i64: 1, 4, 256>}, {pipeline_mode = #tpu.pipeline_mode<synchronous>, transform_indices = @transform_1, window_bounds = array<i64: 8, 36>}, {pipeline_mode = #tpu.pipeline_mode<synchronous>, transform_indices = @transform_2, window_bounds = array<i64: 8, 1>}, {pipeline_mode = #tpu.pipeline_mode<synchronous>, transform_indices = @transform_3, window_bounds = array<i64: 8, 72>}, {pipeline_mode = #tpu.pipeline_mode<synchronous>, transform_indices = @transform_4, window_bounds = array<i64: 8, 1>}, {pipeline_mode = #tpu.pipeline_mode<synchronous>, transform_indices = @transform_5, window_bounds = array<i64: 1, 288>}, {transform_indices = @transform_6, window_bounds = array<i64: 1, 8, 288>}]} {
    %cst = arith.constant 0.000000e+00 : f32
    %0 = vector.broadcast %cst : f32 to vector<4x326xf32>
    %c0 = arith.constant 0 : index
    %c0_0 = arith.constant 0 : index
    %1 = vector.load %arg8[%c0, %c0_0] : memref<4x326xf32, #tpu.memory_space<vmem>>, vector<4x326xf32>
    tpu.vector_store %arg8[%c0, %c0_0], %0 {strides = array<i32>} : memref<4x326xf32, #tpu.memory_space<vmem>>, vector<4x326xf32>,
    %cst_1 = arith.constant 0.000000e+00 : f32
    %2 = vector.broadcast %cst_1 : f32 to vector<8x326xf32>
    %c0_2 = arith.constant 0 : index
    %c0_3 = arith.constant 0 : index
    %3 = vector.load %arg9[%c0_2, %c0_3] : memref<8x326xf32, #tpu.memory_space<vmem>>, vector<8x326xf32>
    tpu.vector_store %arg9[%c0_2, %c0_3], %2 {strides = array<i32>} : memref<8x326xf32, #tpu.memory_space<vmem>>, vector<8x326xf32>,
    %c0_4 = arith.constant 0 : index
    %c0_5 = arith.constant 0 : index
    %c0_6 = arith.constant 0 : index
    %4 = vector.load %arg1[%c0_4, %c0_5, %c0_6] : memref<1x4x256xf32, #tpu.memory_space<vmem>>, vector<1x4x16xf32>
    %5 = vector.shape_cast %4 : vector<1x4x16xf32> to vector<4x16xf32>
    %c0_7 = arith.constant 0 : index
    %c19 = arith.constant 19 : index
    %6 = vector.load %arg8[%c0_7, %c19] : memref<4x326xf32, #tpu.memory_space<vmem>>, vector<4x16xf32>
    tpu.vector_store %arg8[%c0_7, %c19], %5 {strides = array<i32>} : memref<4x326xf32, #tpu.memory_space<vmem>>, vector<4x16xf32>,
    %c0_8 = arith.constant 0 : index
    %c0_9 = arith.constant 0 : index
    %c16 = arith.constant 16 : index
    %7 = vector.load %arg1[%c0_8, %c0_9, %c16] : memref<1x4x256xf32, #tpu.memory_space<vmem>>, vector<1x4x16xf32>
    %8 = vector.shape_cast %7 : vector<1x4x16xf32> to vector<4x16xf32>
    %c0_10 = arith.constant 0 : index
    %c37 = arith.constant 37 : index
    %9 = vector.load %arg8[%c0_10, %c37] : memref<4x326xf32, #tpu.memory_space<vmem>>, vector<4x16xf32>
    tpu.vector_store %arg8[%c0_10, %c37], %8 {strides = array<i32>} : memref<4x326xf32, #tpu.memory_space<vmem>>, vector<4x16xf32>,
    %c0_11 = arith.constant 0 : index
    %c0_12 = arith.constant 0 : index
    %c32 = arith.constant 32 : index
    %10 = vector.load %arg1[%c0_11, %c0_12, %c32] : memref<1x4x256xf32, #tpu.memory_space<vmem>>, vector<1x4x16xf32>
    %11 = vector.shape_cast %10 : vector<1x4x16xf32> to vector<4x16xf32>
    %c0_13 = arith.constant 0 : index
    %c55 = arith.constant 55 : index
    %12 = vector.load %arg8[%c0_13, %c55] : memref<4x326xf32, #tpu.memory_space<vmem>>, vector<4x16xf32>
    tpu.vector_store %arg8[%c0_13, %c55], %11 {strides = array<i32>} : memref<4x326xf32, #tpu.memory_space<vmem>>, vector<4x16xf32>,
    %c0_14 = arith.constant 0 : index
    %c0_15 = arith.constant 0 : index
    %c48 = arith.constant 48 : index
    %13 = vector.load %arg1[%c0_14, %c0_15, %c48] : memref<1x4x256xf32, #tpu.memory_space<vmem>>, vector<1x4x16xf32>
    %14 = vector.shape_cast %13 : vector<1x4x16xf32> to vector<4x16xf32>
    %c0_16 = arith.constant 0 : index
    %c73 = arith.constant 73 : index
    %15 = vector.load %arg8[%c0_16, %c73] : memref<4x326xf32, #tpu.memory_space<vmem>>, vector<4x16xf32>
    tpu.vector_store %arg8[%c0_16, %c73], %14 {strides = array<i32>} : memref<4x326xf32, #tpu.memory_space<vmem>>, vector<4x16xf32>,
    %c0_17 = arith.constant 0 : index
    %c0_18 = arith.constant 0 : index
    %c64 = arith.constant 64 : index
    %16 = vector.load %arg1[%c0_17, %c0_18, %c64] : memref<1x4x256xf32, #tpu.memory_space<vmem>>, vector<1x4x16xf32>
    %17 = vector.shape_cast %16 : vector<1x4x16xf32> to vector<4x16xf32>
    %c0_19 = arith.constant 0 : index
    %c91 = arith.constant 91 : index
    %18 = vector.load %arg8[%c0_19, %c91] : memref<4x326xf32, #tpu.memory_space<vmem>>, vector<4x16xf32>
    tpu.vector_store %arg8[%c0_19, %c91], %17 {strides = array<i32>} : memref<4x326xf32, #tpu.memory_space<vmem>>, vector<4x16xf32>,
    %c0_20 = arith.constant 0 : index
    %c0_21 = arith.constant 0 : index
    %c80 = arith.constant 80 : index
    %19 = vector.load %arg1[%c0_20, %c0_21, %c80] : memref<1x4x256xf32, #tpu.memory_space<vmem>>, vector<1x4x16xf32>
    %20 = vector.shape_cast %19 : vector<1x4x16xf32> to vector<4x16xf32>
    %c0_22 = arith.constant 0 : index
    %c109 = arith.constant 109 : index
    %21 = vector.load %arg8[%c0_22, %c109] : memref<4x326xf32, #tpu.memory_space<vmem>>, vector<4x16xf32>
    tpu.vector_store %arg8[%c0_22, %c109], %20 {strides = array<i32>} : memref<4x326xf32, #tpu.memory_space<vmem>>, vector<4x16xf32>,
    %c0_23 = arith.constant 0 : index
    %c0_24 = arith.constant 0 : index
    %c96 = arith.constant 96 : index
    %22 = vector.load %arg1[%c0_23, %c0_24, %c96] : memref<1x4x256xf32, #tpu.memory_space<vmem>>, vector<1x4x16xf32>
    %23 = vector.shape_cast %22 : vector<1x4x16xf32> to vector<4x16xf32>
    %c0_25 = arith.constant 0 : index
    %c127 = arith.constant 127 : index
    %24 = vector.load %arg8[%c0_25, %c127] : memref<4x326xf32, #tpu.memory_space<vmem>>, vector<4x16xf32>
    tpu.vector_store %arg8[%c0_25, %c127], %23 {strides = array<i32>} : memref<4x326xf32, #tpu.memory_space<vmem>>, vector<4x16xf32>,
    %c0_26 = arith.constant 0 : index
    %c0_27 = arith.constant 0 : index
    %c112 = arith.constant 112 : index
    %25 = vector.load %arg1[%c0_26, %c0_27, %c112] : memref<1x4x256xf32, #tpu.memory_space<vmem>>, vector<1x4x16xf32>
    %26 = vector.shape_cast %25 : vector<1x4x16xf32> to vector<4x16xf32>
    %c0_28 = arith.constant 0 : index
    %c145 = arith.constant 145 : index
    %27 = vector.load %arg8[%c0_28, %c145] : memref<4x326xf32, #tpu.memory_space<vmem>>, vector<4x16xf32>
    tpu.vector_store %arg8[%c0_28, %c145], %26 {strides = array<i32>} : memref<4x326xf32, #tpu.memory_space<vmem>>, vector<4x16xf32>,
    %c0_29 = arith.constant 0 : index
    %c0_30 = arith.constant 0 : index
    %c128 = arith.constant 128 : index
    %28 = vector.load %arg1[%c0_29, %c0_30, %c128] : memref<1x4x256xf32, #tpu.memory_space<vmem>>, vector<1x4x16xf32>
    %29 = vector.shape_cast %28 : vector<1x4x16xf32> to vector<4x16xf32>
    %c0_31 = arith.constant 0 : index
    %c163 = arith.constant 163 : index
    %30 = vector.load %arg8[%c0_31, %c163] : memref<4x326xf32, #tpu.memory_space<vmem>>, vector<4x16xf32>
    tpu.vector_store %arg8[%c0_31, %c163], %29 {strides = array<i32>} : memref<4x326xf32, #tpu.memory_space<vmem>>, vector<4x16xf32>,
    %c0_32 = arith.constant 0 : index
    %c0_33 = arith.constant 0 : index
    %c144 = arith.constant 144 : index
    %31 = vector.load %arg1[%c0_32, %c0_33, %c144] : memref<1x4x256xf32, #tpu.memory_space<vmem>>, vector<1x4x16xf32>
    %32 = vector.shape_cast %31 : vector<1x4x16xf32> to vector<4x16xf32>
    %c0_34 = arith.constant 0 : index
    %c181 = arith.constant 181 : index
    %33 = vector.load %arg8[%c0_34, %c181] : memref<4x326xf32, #tpu.memory_space<vmem>>, vector<4x16xf32>
    tpu.vector_store %arg8[%c0_34, %c181], %32 {strides = array<i32>} : memref<4x326xf32, #tpu.memory_space<vmem>>, vector<4x16xf32>,
    %c0_35 = arith.constant 0 : index
    %c0_36 = arith.constant 0 : index
    %c160 = arith.constant 160 : index
    %34 = vector.load %arg1[%c0_35, %c0_36, %c160] : memref<1x4x256xf32, #tpu.memory_space<vmem>>, vector<1x4x16xf32>
    %35 = vector.shape_cast %34 : vector<1x4x16xf32> to vector<4x16xf32>
    %c0_37 = arith.constant 0 : index
    %c199 = arith.constant 199 : index
    %36 = vector.load %arg8[%c0_37, %c199] : memref<4x326xf32, #tpu.memory_space<vmem>>, vector<4x16xf32>
    tpu.vector_store %arg8[%c0_37, %c199], %35 {strides = array<i32>} : memref<4x326xf32, #tpu.memory_space<vmem>>, vector<4x16xf32>,
    %c0_38 = arith.constant 0 : index
    %c0_39 = arith.constant 0 : index
    %c176 = arith.constant 176 : index
    %37 = vector.load %arg1[%c0_38, %c0_39, %c176] : memref<1x4x256xf32, #tpu.memory_space<vmem>>, vector<1x4x16xf32>
    %38 = vector.shape_cast %37 : vector<1x4x16xf32> to vector<4x16xf32>
    %c0_40 = arith.constant 0 : index
    %c217 = arith.constant 217 : index
    %39 = vector.load %arg8[%c0_40, %c217] : memref<4x326xf32, #tpu.memory_space<vmem>>, vector<4x16xf32>
    tpu.vector_store %arg8[%c0_40, %c217], %38 {strides = array<i32>} : memref<4x326xf32, #tpu.memory_space<vmem>>, vector<4x16xf32>,
    %c0_41 = arith.constant 0 : index
    %c0_42 = arith.constant 0 : index
    %c192 = arith.constant 192 : index
    %40 = vector.load %arg1[%c0_41, %c0_42, %c192] : memref<1x4x256xf32, #tpu.memory_space<vmem>>, vector<1x4x16xf32>
    %41 = vector.shape_cast %40 : vector<1x4x16xf32> to vector<4x16xf32>
    %c0_43 = arith.constant 0 : index
    %c235 = arith.constant 235 : index
    %42 = vector.load %arg8[%c0_43, %c235] : memref<4x326xf32, #tpu.memory_space<vmem>>, vector<4x16xf32>
    tpu.vector_store %arg8[%c0_43, %c235], %41 {strides = array<i32>} : memref<4x326xf32, #tpu.memory_space<vmem>>, vector<4x16xf32>,
    %c0_44 = arith.constant 0 : index
    %c0_45 = arith.constant 0 : index
    %c208 = arith.constant 208 : index
    %43 = vector.load %arg1[%c0_44, %c0_45, %c208] : memref<1x4x256xf32, #tpu.memory_space<vmem>>, vector<1x4x16xf32>
    %44 = vector.shape_cast %43 : vector<1x4x16xf32> to vector<4x16xf32>
    %c0_46 = arith.constant 0 : index
    %c253 = arith.constant 253 : index
    %45 = vector.load %arg8[%c0_46, %c253] : memref<4x326xf32, #tpu.memory_space<vmem>>, vector<4x16xf32>
    tpu.vector_store %arg8[%c0_46, %c253], %44 {strides = array<i32>} : memref<4x326xf32, #tpu.memory_space<vmem>>, vector<4x16xf32>,
    %c0_47 = arith.constant 0 : index
    %c0_48 = arith.constant 0 : index
    %c224 = arith.constant 224 : index
    %46 = vector.load %arg1[%c0_47, %c0_48, %c224] : memref<1x4x256xf32, #tpu.memory_space<vmem>>, vector<1x4x16xf32>
    %47 = vector.shape_cast %46 : vector<1x4x16xf32> to vector<4x16xf32>
    %c0_49 = arith.constant 0 : index
    %c271 = arith.constant 271 : index
    %48 = vector.load %arg8[%c0_49, %c271] : memref<4x326xf32, #tpu.memory_space<vmem>>, vector<4x16xf32>
    tpu.vector_store %arg8[%c0_49, %c271], %47 {strides = array<i32>} : memref<4x326xf32, #tpu.memory_space<vmem>>, vector<4x16xf32>,
    %c0_50 = arith.constant 0 : index
    %c0_51 = arith.constant 0 : index
    %c240 = arith.constant 240 : index
    %49 = vector.load %arg1[%c0_50, %c0_51, %c240] : memref<1x4x256xf32, #tpu.memory_space<vmem>>, vector<1x4x16xf32>
    %50 = vector.shape_cast %49 : vector<1x4x16xf32> to vector<4x16xf32>
    %c0_52 = arith.constant 0 : index
    %c289 = arith.constant 289 : index
    %51 = vector.load %arg8[%c0_52, %c289] : memref<4x326xf32, #tpu.memory_space<vmem>>, vector<4x16xf32>
    tpu.vector_store %arg8[%c0_52, %c289], %50 {strides = array<i32>} : memref<4x326xf32, #tpu.memory_space<vmem>>, vector<4x16xf32>,
    %c0_53 = arith.constant 0 : index
    %c0_54 = arith.constant 0 : index
    %52 = vector.load %arg8[%c0_53, %c0_54] : memref<4x326xf32, #tpu.memory_space<vmem>>, vector<4x288xf32>
    %c0_55 = arith.constant 0 : index
    %c0_56 = arith.constant 0 : index
    %53 = vector.load %arg10[%c0_55, %c0_56] : memref<36x288xf32, #tpu.memory_space<vmem>>, vector<4x288xf32>
    tpu.vector_store %arg10[%c0_55, %c0_56], %52 {strides = array<i32>} : memref<36x288xf32, #tpu.memory_space<vmem>>, vector<4x288xf32>,
    %c0_57 = arith.constant 0 : index
    %c1 = arith.constant 1 : index
    %54 = vector.load %arg8[%c0_57, %c1] : memref<4x326xf32, #tpu.memory_space<vmem>>, vector<4x288xf32>
    %c4 = arith.constant 4 : index
    %c0_58 = arith.constant 0 : index
    %55 = vector.load %arg10[%c4, %c0_58] : memref<36x288xf32, #tpu.memory_space<vmem>>, vector<4x288xf32>
    tpu.vector_store %arg10[%c4, %c0_58], %54 {strides = array<i32>} : memref<36x288xf32, #tpu.memory_space<vmem>>, vector<4x288xf32>,
    %c0_59 = arith.constant 0 : index
    %c2 = arith.constant 2 : index
    %56 = vector.load %arg8[%c0_59, %c2] : memref<4x326xf32, #tpu.memory_space<vmem>>, vector<4x288xf32>
    %c8 = arith.constant 8 : index
    %c0_60 = arith.constant 0 : index
    %57 = vector.load %arg10[%c8, %c0_60] : memref<36x288xf32, #tpu.memory_space<vmem>>, vector<4x288xf32>
    tpu.vector_store %arg10[%c8, %c0_60], %56 {strides = array<i32>} : memref<36x288xf32, #tpu.memory_space<vmem>>, vector<4x288xf32>,
    %c0_61 = arith.constant 0 : index
    %c18 = arith.constant 18 : index
    %58 = vector.load %arg8[%c0_61, %c18] : memref<4x326xf32, #tpu.memory_space<vmem>>, vector<4x288xf32>
    %c12 = arith.constant 12 : index
    %c0_62 = arith.constant 0 : index
    %59 = vector.load %arg10[%c12, %c0_62] : memref<36x288xf32, #tpu.memory_space<vmem>>, vector<4x288xf32>
    tpu.vector_store %arg10[%c12, %c0_62], %58 {strides = array<i32>} : memref<36x288xf32, #tpu.memory_space<vmem>>, vector<4x288xf32>,
    %c0_63 = arith.constant 0 : index
    %c19_64 = arith.constant 19 : index
    %60 = vector.load %arg8[%c0_63, %c19_64] : memref<4x326xf32, #tpu.memory_space<vmem>>, vector<4x288xf32>
    %c16_65 = arith.constant 16 : index
    %c0_66 = arith.constant 0 : index
    %61 = vector.load %arg10[%c16_65, %c0_66] : memref<36x288xf32, #tpu.memory_space<vmem>>, vector<4x288xf32>
    tpu.vector_store %arg10[%c16_65, %c0_66], %60 {strides = array<i32>} : memref<36x288xf32, #tpu.memory_space<vmem>>, vector<4x288xf32>,
    %c0_67 = arith.constant 0 : index
    %c20 = arith.constant 20 : index
    %62 = vector.load %arg8[%c0_67, %c20] : memref<4x326xf32, #tpu.memory_space<vmem>>, vector<4x288xf32>
    %c20_68 = arith.constant 20 : index
    %c0_69 = arith.constant 0 : index
    %63 = vector.load %arg10[%c20_68, %c0_69] : memref<36x288xf32, #tpu.memory_space<vmem>>, vector<4x288xf32>
    tpu.vector_store %arg10[%c20_68, %c0_69], %62 {strides = array<i32>} : memref<36x288xf32, #tpu.memory_space<vmem>>, vector<4x288xf32>,
    %c0_70 = arith.constant 0 : index
    %c36 = arith.constant 36 : index
    %64 = vector.load %arg8[%c0_70, %c36] : memref<4x326xf32, #tpu.memory_space<vmem>>, vector<4x288xf32>
    %c24 = arith.constant 24 : index
    %c0_71 = arith.constant 0 : index
    %65 = vector.load %arg10[%c24, %c0_71] : memref<36x288xf32, #tpu.memory_space<vmem>>, vector<4x288xf32>
    tpu.vector_store %arg10[%c24, %c0_71], %64 {strides = array<i32>} : memref<36x288xf32, #tpu.memory_space<vmem>>, vector<4x288xf32>,
    %c0_72 = arith.constant 0 : index
    %c37_73 = arith.constant 37 : index
    %66 = vector.load %arg8[%c0_72, %c37_73] : memref<4x326xf32, #tpu.memory_space<vmem>>, vector<4x288xf32>
    %c28 = arith.constant 28 : index
    %c0_74 = arith.constant 0 : index
    %67 = vector.load %arg10[%c28, %c0_74] : memref<36x288xf32, #tpu.memory_space<vmem>>, vector<4x288xf32>
    tpu.vector_store %arg10[%c28, %c0_74], %66 {strides = array<i32>} : memref<36x288xf32, #tpu.memory_space<vmem>>, vector<4x288xf32>,
    %c0_75 = arith.constant 0 : index
    %c38 = arith.constant 38 : index
    %68 = vector.load %arg8[%c0_75, %c38] : memref<4x326xf32, #tpu.memory_space<vmem>>, vector<4x288xf32>
    %c32_76 = arith.constant 32 : index
    %c0_77 = arith.constant 0 : index
    %69 = vector.load %arg10[%c32_76, %c0_77] : memref<36x288xf32, #tpu.memory_space<vmem>>, vector<4x288xf32>
    tpu.vector_store %arg10[%c32_76, %c0_77], %68 {strides = array<i32>} : memref<36x288xf32, #tpu.memory_space<vmem>>, vector<4x288xf32>,
    %c0_78 = arith.constant 0 : index
    %c0_79 = arith.constant 0 : index
    %70 = vector.load %arg2[%c0_78, %c0_79] : memref<8x36xf32, #tpu.memory_space<vmem>>, vector<8x36xf32>
    %c0_80 = arith.constant 0 : index
    %c0_81 = arith.constant 0 : index
    %71 = vector.load %arg10[%c0_80, %c0_81] : memref<36x288xf32, #tpu.memory_space<vmem>>, vector<36x288xf32>
    %cst_82 = arith.constant dense<0.000000e+00> : vector<8x288xf32>
    %72 = tpu.matmul %70, %71, %cst_82 {dimension_numbers = #tpu.dot_dimension_numbers<[1], [0], [0], [1], [0, 0, 1, 1], [], []>} : vector<8x36xf32>, vector<36x288xf32>, vector<8x288xf32> -> vector<8x288xf32>
    %c0_83 = arith.constant 0 : index
    %c0_84 = arith.constant 0 : index
    %73 = vector.load %arg3[%c0_83, %c0_84] : memref<8x1xf32, #tpu.memory_space<vmem>>, vector<8x1xf32>
    %74 = vector.broadcast %73 : vector<8x1xf32> to vector<8x288xf32>
    %75 = arith.addf %72, %74 : vector<8x288xf32>
    %cst_85 = arith.constant 0.000000e+00 : f32
    %76 = vector.broadcast %cst_85 : f32 to vector<8x288xf32>
    %77 = arith.cmpf ogt, %75, %76 : vector<8x288xf32>
    %cst_86 = arith.constant 0.00999999977 : f32
    %78 = vector.broadcast %cst_86 : f32 to vector<8x288xf32>
    %79 = arith.mulf %78, %75 : vector<8x288xf32>
    %80 = arith.select %77, %75, %79 : vector<8x288xi1>, vector<8x288xf32>
    %c0_87 = arith.constant 0 : index
    %c0_88 = arith.constant 0 : index
    %81 = vector.load %arg6[%c0_87, %c0_88] : memref<1x288xf32, #tpu.memory_space<vmem>>, vector<1x288xf32>
    %82 = vector.broadcast %81 : vector<1x288xf32> to vector<8x288xf32>
    %83 = arith.mulf %80, %82 : vector<8x288xf32>
    %c0_89 = arith.constant 0 : index
    %c19_90 = arith.constant 19 : index
    %84 = vector.load %arg9[%c0_89, %c19_90] : memref<8x326xf32, #tpu.memory_space<vmem>>, vector<8x288xf32>
    tpu.vector_store %arg9[%c0_89, %c19_90], %83 {strides = array<i32>} : memref<8x326xf32, #tpu.memory_space<vmem>>, vector<8x288xf32>,
    %c0_91 = arith.constant 0 : index
    %c0_92 = arith.constant 0 : index
    %85 = vector.load %arg9[%c0_91, %c0_92] : memref<8x326xf32, #tpu.memory_space<vmem>>, vector<8x288xf32>
    %c0_93 = arith.constant 0 : index
    %c0_94 = arith.constant 0 : index
    %86 = vector.load %arg11[%c0_93, %c0_94] : memref<72x288xf32, #tpu.memory_space<vmem>>, vector<8x288xf32>
    tpu.vector_store %arg11[%c0_93, %c0_94], %85 {strides = array<i32>} : memref<72x288xf32, #tpu.memory_space<vmem>>, vector<8x288xf32>,
    %c0_95 = arith.constant 0 : index
    %c1_96 = arith.constant 1 : index
    %87 = vector.load %arg9[%c0_95, %c1_96] : memref<8x326xf32, #tpu.memory_space<vmem>>, vector<8x288xf32>
    %c8_97 = arith.constant 8 : index
    %c0_98 = arith.constant 0 : index
    %88 = vector.load %arg11[%c8_97, %c0_98] : memref<72x288xf32, #tpu.memory_space<vmem>>, vector<8x288xf32>
    tpu.vector_store %arg11[%c8_97, %c0_98], %87 {strides = array<i32>} : memref<72x288xf32, #tpu.memory_space<vmem>>, vector<8x288xf32>,
    %c0_99 = arith.constant 0 : index
    %c2_100 = arith.constant 2 : index
    %89 = vector.load %arg9[%c0_99, %c2_100] : memref<8x326xf32, #tpu.memory_space<vmem>>, vector<8x288xf32>
    %c16_101 = arith.constant 16 : index
    %c0_102 = arith.constant 0 : index
    %90 = vector.load %arg11[%c16_101, %c0_102] : memref<72x288xf32, #tpu.memory_space<vmem>>, vector<8x288xf32>
    tpu.vector_store %arg11[%c16_101, %c0_102], %89 {strides = array<i32>} : memref<72x288xf32, #tpu.memory_space<vmem>>, vector<8x288xf32>,
    %c0_103 = arith.constant 0 : index
    %c18_104 = arith.constant 18 : index
    %91 = vector.load %arg9[%c0_103, %c18_104] : memref<8x326xf32, #tpu.memory_space<vmem>>, vector<8x288xf32>
    %c24_105 = arith.constant 24 : index
    %c0_106 = arith.constant 0 : index
    %92 = vector.load %arg11[%c24_105, %c0_106] : memref<72x288xf32, #tpu.memory_space<vmem>>, vector<8x288xf32>
    tpu.vector_store %arg11[%c24_105, %c0_106], %91 {strides = array<i32>} : memref<72x288xf32, #tpu.memory_space<vmem>>, vector<8x288xf32>,
    %c0_107 = arith.constant 0 : index
    %c19_108 = arith.constant 19 : index
    %93 = vector.load %arg9[%c0_107, %c19_108] : memref<8x326xf32, #tpu.memory_space<vmem>>, vector<8x288xf32>
    %c32_109 = arith.constant 32 : index
    %c0_110 = arith.constant 0 : index
    %94 = vector.load %arg11[%c32_109, %c0_110] : memref<72x288xf32, #tpu.memory_space<vmem>>, vector<8x288xf32>
    tpu.vector_store %arg11[%c32_109, %c0_110], %93 {strides = array<i32>} : memref<72x288xf32, #tpu.memory_space<vmem>>, vector<8x288xf32>,
    %c0_111 = arith.constant 0 : index
    %c20_112 = arith.constant 20 : index
    %95 = vector.load %arg9[%c0_111, %c20_112] : memref<8x326xf32, #tpu.memory_space<vmem>>, vector<8x288xf32>
    %c40 = arith.constant 40 : index
    %c0_113 = arith.constant 0 : index
    %96 = vector.load %arg11[%c40, %c0_113] : memref<72x288xf32, #tpu.memory_space<vmem>>, vector<8x288xf32>
    tpu.vector_store %arg11[%c40, %c0_113], %95 {strides = array<i32>} : memref<72x288xf32, #tpu.memory_space<vmem>>, vector<8x288xf32>,
    %c0_114 = arith.constant 0 : index
    %c36_115 = arith.constant 36 : index
    %97 = vector.load %arg9[%c0_114, %c36_115] : memref<8x326xf32, #tpu.memory_space<vmem>>, vector<8x288xf32>
    %c48_116 = arith.constant 48 : index
    %c0_117 = arith.constant 0 : index
    %98 = vector.load %arg11[%c48_116, %c0_117] : memref<72x288xf32, #tpu.memory_space<vmem>>, vector<8x288xf32>
    tpu.vector_store %arg11[%c48_116, %c0_117], %97 {strides = array<i32>} : memref<72x288xf32, #tpu.memory_space<vmem>>, vector<8x288xf32>,
    %c0_118 = arith.constant 0 : index
    %c37_119 = arith.constant 37 : index
    %99 = vector.load %arg9[%c0_118, %c37_119] : memref<8x326xf32, #tpu.memory_space<vmem>>, vector<8x288xf32>
    %c56 = arith.constant 56 : index
    %c0_120 = arith.constant 0 : index
    %100 = vector.load %arg11[%c56, %c0_120] : memref<72x288xf32, #tpu.memory_space<vmem>>, vector<8x288xf32>
    tpu.vector_store %arg11[%c56, %c0_120], %99 {strides = array<i32>} : memref<72x288xf32, #tpu.memory_space<vmem>>, vector<8x288xf32>,
    %c0_121 = arith.constant 0 : index
    %c38_122 = arith.constant 38 : index
    %101 = vector.load %arg9[%c0_121, %c38_122] : memref<8x326xf32, #tpu.memory_space<vmem>>, vector<8x288xf32>
    %c64_123 = arith.constant 64 : index
    %c0_124 = arith.constant 0 : index
    %102 = vector.load %arg11[%c64_123, %c0_124] : memref<72x288xf32, #tpu.memory_space<vmem>>, vector<8x288xf32>
    tpu.vector_store %arg11[%c64_123, %c0_124], %101 {strides = array<i32>} : memref<72x288xf32, #tpu.memory_space<vmem>>, vector<8x288xf32>,
    %c0_125 = arith.constant 0 : index
    %c0_126 = arith.constant 0 : index
    %103 = vector.load %arg4[%c0_125, %c0_126] : memref<8x72xf32, #tpu.memory_space<vmem>>, vector<8x72xf32>
    %c0_127 = arith.constant 0 : index
    %c0_128 = arith.constant 0 : index
    %104 = vector.load %arg11[%c0_127, %c0_128] : memref<72x288xf32, #tpu.memory_space<vmem>>, vector<72x288xf32>
    %cst_129 = arith.constant dense<0.000000e+00> : vector<8x288xf32>
    %105 = tpu.matmul %103, %104, %cst_129 {dimension_numbers = #tpu.dot_dimension_numbers<[1], [0], [0], [1], [0, 0, 1, 1], [], []>} : vector<8x72xf32>, vector<72x288xf32>, vector<8x288xf32> -> vector<8x288xf32>
    %c0_130 = arith.constant 0 : index
    %c0_131 = arith.constant 0 : index
    %106 = vector.load %arg5[%c0_130, %c0_131] : memref<8x1xf32, #tpu.memory_space<vmem>>, vector<8x1xf32>
    %107 = vector.broadcast %106 : vector<8x1xf32> to vector<8x288xf32>
    %108 = arith.addf %105, %107 : vector<8x288xf32>
    %cst_132 = arith.constant 0.000000e+00 : f32
    %109 = vector.broadcast %cst_132 : f32 to vector<8x288xf32>
    %110 = arith.cmpf ogt, %108, %109 : vector<8x288xf32>
    %cst_133 = arith.constant 0.00999999977 : f32
    %111 = vector.broadcast %cst_133 : f32 to vector<8x288xf32>
    %112 = arith.mulf %111, %108 : vector<8x288xf32>
    %113 = arith.select %110, %108, %112 : vector<8x288xi1>, vector<8x288xf32>
    %114 = arith.addf %80, %113 : vector<8x288xf32>
    %c0_134 = arith.constant 0 : index
    %c0_135 = arith.constant 0 : index
    %c0_136 = arith.constant 0 : index
    %115 = vector.load %arg7[%c0_134, %c0_135, %c0_136] : memref<1x8x288xf32, #tpu.memory_space<vmem>>, vector<1x8x288xf32>
    %116 = vector.shape_cast %115 : vector<1x8x288xf32> to vector<8x288xf32>
    %117 = vector.shape_cast %114 : vector<8x288xf32> to vector<1x8x288xf32>
    tpu.vector_store %arg7[%c0_134, %c0_135, %c0_136], %117 {strides = array<i32>} : memref<1x8x288xf32, #tpu.memory_space<vmem>>, vector<1x8x288xf32>,
    return
  }
  func.func @transform_0(%arg0: i32) -> (i32, i32, i32) {
    %c0_i32 = arith.constant 0 : i32
    %c0_i32_0 = arith.constant 0 : i32
    %c0_i32_1 = arith.constant 0 : i32
    return %arg0, %c0_i32, %c0_i32_0 : i32, i32, i32
  }
  func.func @transform_1(%arg0: i32) -> (i32, i32) {
    %c0_i32 = arith.constant 0 : i32
    %c0_i32_0 = arith.constant 0 : i32
    %c0_i32_1 = arith.constant 0 : i32
    return %c0_i32, %c0_i32_0 : i32, i32
  }
  func.func @transform_2(%arg0: i32) -> (i32, i32) {
    %c0_i32 = arith.constant 0 : i32
    %c0_i32_0 = arith.constant 0 : i32
    %c0_i32_1 = arith.constant 0 : i32
    return %c0_i32, %c0_i32_0 : i32, i32
  }
  func.func @transform_3(%arg0: i32) -> (i32, i32) {
    %c0_i32 = arith.constant 0 : i32
    %c0_i32_0 = arith.constant 0 : i32
    %c0_i32_1 = arith.constant 0 : i32
    return %c0_i32, %c0_i32_0 : i32, i32
  }
  func.func @transform_4(%arg0: i32) -> (i32, i32) {
    %c0_i32 = arith.constant 0 : i32
    %c0_i32_0 = arith.constant 0 : i32
    %c0_i32_1 = arith.constant 0 : i32
    return %c0_i32, %c0_i32_0 : i32, i32
  }
  func.func @transform_5(%arg0: i32) -> (i32, i32) {
    %c0_i32 = arith.constant 0 : i32
    %c0_i32_0 = arith.constant 0 : i32
    %c0_i32_1 = arith.constant 0 : i32
    return %c0_i32, %c0_i32_0 : i32, i32
  }
  func.func @transform_6(%arg0: i32) -> (i32, i32, i32) {
    %c0_i32 = arith.constant 0 : i32
    %c0_i32_0 = arith.constant 0 : i32
    %c0_i32_1 = arith.constant 0 : i32
    return %arg0, %c0_i32, %c0_i32_0 : i32, i32, i32
  }
}

</mosaic_0001>

<bundles_post_ra>
// kernel: my_conv_block_forward.1
= control target key start
LH: loop header
LB: loop body
LE: loop exit
PB: predicated region body
PF: predicated region fallthrough
CT: control target
= control target key end

     0   :  { %s1201_s21 = smov 0   ;;  %s1427_s0 = inlined_call_operand.vmem [shape: f32[2,4,256], index: 0, kind: input, shape index: {}]   ;;  %s1428_s1 = inlined_call_operand.vmem [shape: f32[8,36], index: 1, kind: input, shape index: {}]   ;;  %s1429_s2 = inlined_call_operand.vmem [shape: f32[8,1], index: 2, kind: input, shape index: {}]   ;;  %s1430_s3 = inlined_call_operand.vmem [shape: f32[8,72], index: 3, kind: input, shape index: {}]   ;;  %s1431_s4 = inlined_call_operand.vmem [shape: f32[8,1], index: 4, kind: input, shape index: {}]   ;;  %s1432_s5 = inlined_call_operand.vmem [shape: f32[1,288], index: 5, kind: input, shape index: {}]   ;;  %s1433_s6 = inlined_call_operand.vmem [shape: f32[2,8,288], index: 6, kind: output, shape index: {}]  }
   0x1 LB: > { %s1074_s22 = sadd.s32 4294967295, %s1138_s21   ;;  %p1078_p0 = scmp.ge.s32.totalorder %s1138_s21, 1  ;;  %s1138_s21 = sphi %s1201_s21, %s16_s21  }
   0x2   : > { %p212_p1 = scmp.lt.s32.totalorder %s1138_s21, 3 }
   0x4   : > { %p213_p2 = pnand %p1078_p0, %p212_p1 }
   0x5   : > { %p242_p3 = scmp.lt.s32.totalorder (!%p213_p2), %s1074_s22, 1  ;;  %s1140_s27 = smov (!%p213_p2), 19  }
   0x6   : > { %216 = sbr.rel (%p213_p2) target bundleno = 950 (0x3b6), region = 44  ;;  %s1141_s28 = smov (!%p213_p2), 23  }
   0x7   : > { %s1142_s29 = smov (!%p213_p2), 31   ;;  %s1143_s30 = smov (!%p213_p2), 21  }
   0x8   : > { %s1144_s7 = smov (!%p213_p2), 25   ;;  %s1146_s8 = smov (!%p213_p2), 27  }
   0x9   : > { %s1147_s9 = smov (!%p213_p2), 29   ;;  %s1148_s10 = smov (!%p213_p2), 33  }
   0xa   : > { %s1149_s11 = smov (!%p213_p2), 35   ;;  %s1150_s12 = smov (!%p213_p2), 37  }
   0xb   : > { %s1435_s22 = smov (!%p242_p3, %s1074_s22), 1  ;;  %v1145_v6 = vmov 0.0   ;;  %s1151_s13 = smov 39   ;;  %vm264_vm0 = vcmask 281752   ;;  %vm253_vm1 = vcmask 568320   ;;  %vm271_vm2 = vcmask 429352  }
   0xc   : > { %s1093_s23 = sshll.u32 %s1435_s22, 3  ;;  %252 = vst [vmem:[#allocation2] sm:$0xff] %v1145_v6  ;;  %s1152_s14 = smov 45   ;;  %vm278_vm3 = vcmask 576952   ;;  %vm285_vm4 = vcmask 724552   ;;  %vm292_vm5 = vcmask 872152  }
   0xd   : > { %s1215_s26 = scalar_lea.vmem %s1427_s0, %s1093_s23  ;;  %255 = vst [vmem:[#allocation3] sm:$0xff] %v1145_v6  ;;  %s1153_s15 = smov 41   ;;  %vm309_vm6 = vcmask 1044472   ;;  %vm310_vm7 = vcmask 121860   ;;  %vm306_vm8 = vcmask 252928   ;;  %vm299_vm9 = vcmask 1019752  }
   0xe   : > { %v259_v0 = vld [vmem:[%s1215_s26] sm:$0xf]  ;;  %v320_v9 = vld [vmem:[%s1215_s26 + $0x4] sm:$0xf]  ;;  %s1154_s16 = smov 43   ;;  %s1155_s17 = smov 47   ;;  %vm311_vm10 = vmor %vm310_vm7, %vm309_vm6 }
   0xf   : > { %v273_v1 = vld [vmem:[%s1215_s26] sm:$0xf]  ;;  %261 = vrot.lane.b32.xlu0 %v259_v0, %s1140_s27  ;;  %v327_v10 = vld [vmem:[%s1215_s26 + $0x4] sm:$0xf]  ;;  %s1156_s18 = smov 49   ;;  %vm318_vm11 = vcmask 265352  }
  0x10   : > { %275 = vrot.lane.b32.xlu1 %v273_v1, %s1141_s28  ;;  %v301_v2 = vld [vmem:[%s1215_s26] sm:$0xf]  ;;  %v334_v11 = vld [vmem:[%s1215_s26 + $0x4] sm:$0xf]  ;;  %254 = vst.msk [vmem:[#allocation2 + $0x8] sm:$0xf] %vm253_vm1, %v1145_v6 }
  0x11   : > { %303 = vrot.lane.b32.xlu2 %v301_v2, %s1142_s29  ;;  %v266_v3 = vld [vmem:[%s1215_s26] sm:$0xf]  ;;  %v355_v12 = vld [vmem:[%s1215_s26 + $0x4] sm:$0xf]  ;;  %vm325_vm12 = vcmask 412952   ;;  %vm332_vm13 = vcmask 560552  }
  0x12   : > { %v280_v4 = vld [vmem:[%s1215_s26] sm:$0xf]  ;;  %v341_v13 = vld [vmem:[%s1215_s26 + $0x4] sm:$0xf]  ;;  %vm339_vm14 = vcmask 708152   ;;  %vm363_vm15 = vcmask 1044456  }
  0x13   : > { %v287_v5 = vld [vmem:[%s1215_s26] sm:$0xf]  ;;  %v348_v14 = vld [vmem:[%s1215_s26 + $0x4] sm:$0xf]  ;;  %vm346_vm1 = vcmask 855752   ;;  %vm379_vm6 = vcmask 396552  }
  0x14   : > { %v294_v7 = vld [vmem:[%s1215_s26] sm:$0xf]  ;;  %v367_v15 = vld [vmem:[%s1215_s26 + $0x4] sm:$0xf]  ;;  %vm396_vm7 = vcmask 257024   ;;  %s1157_s19 = smov 127  }
  0x15   : > { %v313_v8 = vld [vmem:[%s1215_s26] sm:$0xf]  ;;  %v374_v16 = vld [vmem:[%s1215_s26 + $0x4] sm:$0xf]  ;;  %s1158_s20 = smov 126   ;;  %s1159_s23 = smov 110  }
  0x16   : > { %s1160_s24 = smov 109   ;;  %s1161_s25 = smov 108  }
  0x17   : > { %268 = vrot.lane.b32.xlu0 %v266_v3, %s1143_s30  ;;  %s1162_s26 = smov 92   ;;  %s1163_s28 = smov 91  }
  0x18   : > { %282 = vrot.lane.b32.xlu1 %v280_v4, %s1144_s7  ;;  %s1164_s29 = smov 90  }
  0x19   : > { %289 = vrot.lane.b32.xlu2 %v287_v5, %s1146_s8 }
  0x1f   : > { %296 = vrot.lane.b32.xlu0 %v294_v7, %s1147_s9 }
  0x20   : > { %315 = vrot.lane.b32.xlu1 %v313_v8, %s1148_s10 }
  0x21   : > { %322 = vrot.lane.b32.xlu2 %v320_v9, %s1149_s11 }
  0x27   : > { %329 = vrot.lane.b32.xlu0 %v327_v10, %s1150_s12 }
  0x28   : > { %336 = vrot.lane.b32.xlu1 %v334_v11, %s1151_s13 }
  0x29   : > { %357 = vrot.lane.b32.xlu2 %v355_v12, %s1152_s14 }
  0x2f   : > { %343 = vrot.lane.b32.xlu0 %v341_v13, %s1153_s15  ;;  %s1094_s15 = smul.u32 24, %s1435_s22 }
  0x30   : > { %350 = vrot.lane.b32.xlu1 %v348_v14, %s1154_s16 }
  0x31   : > { %369 = vrot.lane.b32.xlu2 %v367_v15, %s1155_s17 }
  0x37   : > { %376 = vrot.lane.b32.xlu0 %v374_v16, %s1156_s18  ;;  %s251_s18 = scalar_lea.vmem %s1433_s6, %s1094_s15 }
  0x6b   : > { %v304_v17 = vpop.permute.xlu2 %303 }
  0x6c   : > { %v305_v23 = vrot.slane %v304_v17, 4 }
  0x6e   : > { %v307_v27 = vsel %vm306_vm8, %v305_v23, %v304_v17  ;;  %vm415_vm8 = vcmask 1039360  }
  0x73   : > { %v290_v20 = vpop.permute.xlu2 %289 }
  0x7b   : > { %v323_v24 = vpop.permute.xlu2 %322 }
  0x81   : > { %v262_v18 = vpop.permute.xlu0 %261 }
  0x82   : > { %v276_v19 = vpop.permute.xlu1 %275  ;;  %265 = vst.msk [vmem:[#allocation2] sm:$0xf] %vm264_vm0, %v262_v18  ;;  %vm364_vm0 = vcmask 105476  }
  0x83   : > { %v358_v30 = vpop.permute.xlu2 %357 }
  0x84   : > { %v359_v31 = vrot.slane %v358_v30, 4 }
  0x89   : > { %v269_v21 = vpop.permute.xlu0 %268 }
  0x8a   : > { %v283_v22 = vpop.permute.xlu1 %282  ;;  %272 = vst.msk [vmem:[#allocation2] sm:$0xf] %vm271_vm2, %v269_v21  ;;  %vm360_vm2 = vcmask 367616  }
  0x8b   : > { %279 = vst.msk [vmem:[#allocation2] sm:$0xf] %vm278_vm3, %v276_v19  ;;  %vm353_vm3 = vcmask 1003352   ;;  %v370_v34 = vpop.permute.xlu2 %369  ;;  %v361_v35 = vsel %vm360_vm2, %v359_v31, %v358_v30  ;;  %vm625_vm2 = vcmask 293888  }
  0x8c   : > { %286 = vst.msk [vmem:[#allocation2] sm:$0xf] %vm285_vm4, %v283_v22  ;;  %vm365_vm4 = vmor %vm364_vm0, %vm363_vm15  ;;  %vm423_vm15 = vcmask 261124   ;;  %vm569_vm0 = vcmask 744448  }
  0x8d   : > { %293 = vst.msk [vmem:[#allocation2] sm:$0xf] %vm292_vm5, %v290_v20  ;;  %vm372_vm5 = vcmask 248952  }
  0x91   : > { %v297_v25 = vpop.permute.xlu0 %296 }
  0x92   : > { %v316_v26 = vpop.permute.xlu1 %315  ;;  %300 = vst.msk [vmem:[#allocation2] sm:$0xf] %vm299_vm9, %v297_v25  ;;  %vm441_vm9 = vcmask 1031168  }
  0x93   : > { %312 = vst.msk [vmem:[#allocation2] sm:$0xff] %vm311_vm10, %v307_v27  ;;  %vm467_vm10 = vcmask 900096  }
  0x94   : > { %319 = vst.msk [vmem:[#allocation2 + $0x4] sm:$0xf] %vm318_vm11, %v316_v26  ;;  %vm492_vm11 = vcmask 891904  }
  0x95   : > { %326 = vst.msk [vmem:[#allocation2 + $0x4] sm:$0xf] %vm325_vm12, %v323_v24  ;;  %vm518_vm12 = vcmask 883712  }
  0x99   : > { %v330_v28 = vpop.permute.xlu0 %329 }
  0x9a   : > { %v337_v29 = vpop.permute.xlu1 %336  ;;  %333 = vst.msk [vmem:[#allocation2 + $0x4] sm:$0xf] %vm332_vm13, %v330_v28  ;;  %vm543_vm13 = vcmask 752640  }
  0x9b   : > { %340 = vst.msk [vmem:[#allocation2 + $0x4] sm:$0xf] %vm339_vm14, %v337_v29  ;;  %vm594_vm14 = vcmask 736256  }
  0xa1   : > { %v344_v32 = vpop.permute.xlu0 %343 }
  0xa2   : > { %v351_v33 = vpop.permute.xlu1 %350  ;;  %347 = vst.msk [vmem:[#allocation2 + $0x4] sm:$0xf] %vm346_vm1, %v344_v32  ;;  %vm629_vm1 = vcmask 1043456  }
  0xa3   : > { %354 = vst.msk [vmem:[#allocation2 + $0x4] sm:$0xf] %vm353_vm3, %v351_v33 }
  0xa4   : > { %366 = vst.msk [vmem:[#allocation2 + $0x4] sm:$0xff] %vm365_vm4, %v361_v35 }
  0xa5   : > { %373 = vst.msk [vmem:[#allocation2 + $0x8] sm:$0xf] %vm372_vm5, %v370_v34 }
  0xa9   : > { %v377_v36 = vpop.permute.xlu0 %376 }
  0xaa   : > { %380 = vst.msk [vmem:[#allocation2 + $0x8] sm:$0xf] %vm379_vm6, %v377_v36  ;;  %vm734_vm6 = vcmask 1047704  }
  0xab   : > { %v1237_v37 = vld [vmem:[#allocation2] sm:$0xff] }
  0xac   : > { %385 = vst [vmem:[#allocation1] ss:$2 sm:$0xff] %v1237_v37 }
  0xb1   : > { %v382_v38 = vld [vmem:[#allocation2 + $0x8] sm:$0xf] }
  0xb2   : > { %387 = vst [vmem:[#allocation1 + $0x10] ss:$2 sm:$0xff] %v382_v38  ;;  %v399_v42 = vld [vmem:[#allocation2 + $0x8] sm:$0xf]  ;;  %v1165_v38 = vmov 0  }
  0xb3   : > { %v388_v39 = vld.sshfl [vmem:[#allocation1] sm:$0xff pattern:$0x75316420]  ;;  %v389_v40 = vld.sshfl [vmem:[#allocation1 + $0x8] sm:$0xff pattern:$0x75316420]  ;;  %1129 = vset.pattern.permute.xlu1 %v1165_v38  ;;  %1130 = vset.pattern.permute.xlu2 %v1165_v38 }
  0xb4   : > { %403 = vst [vmem:[#allocation1 + $0x1] ss:$2 sm:$0xff] %v1237_v37  ;;  %v426_v46 = vld [vmem:[#allocation2 + $0x8] sm:$0xf]  ;;  %1131 = vset.pattern.permute.xlu0 %v1165_v38 }
  0xb5   : > { %394 = vst [vmem:[#allocation4] sm:$0xf] %v388_v39  ;;  %v451_v50 = vld [vmem:[#allocation2 + $0x8] sm:$0xf] }
  0xb6   : > { %395 = vst [vmem:[#allocation4 + $0x8] sm:$0xf] %v389_v40  ;;  %v477_v53 = vld [vmem:[#allocation2 + $0x8] sm:$0xf] }
  0xb7   : > { %v502_v57 = vld [vmem:[#allocation2 + $0x8] sm:$0xf] }
  0xb8   : > { %v528_v61 = vld [vmem:[#allocation2 + $0x8] sm:$0xf] }
  0xb9   : > { %v390_v41 = vld.sshfl [vmem:[#allocation1 + $0x10] sm:$0xff pattern:$0x75316420] }
  0xba   : > { %405 = vst [vmem:[#allocation1 + $0x11] ss:$2 sm:$0xff] %v399_v42  ;;  %v553_v1 = vld [vmem:[#allocation2 + $0x8] sm:$0xf] }
  0xbb   : > { %v407_v43 = vld.sshfl [vmem:[#allocation1 + $0x8] sm:$0xff pattern:$0x75316420]  ;;  %v406_v44 = vld.sshfl [vmem:[#allocation1] sm:$0xff pattern:$0x75316420] }
  0xbc   : > { %411 = vrot.lane.b32.xlu1 %v407_v43, %s1157_s19  ;;  %409 = vrot.lane.b32.xlu0 %v406_v44, %s1157_s19  ;;  %429 = vst [vmem:[#allocation1] ss:$2 sm:$0xff] %v1237_v37  ;;  %v579_v5 = vld [vmem:[#allocation2 + $0x8] sm:$0xf] }
  0xbd   : > { %397 = vst.msk [vmem:[#allocation4 + $0x10] sm:$0xf] %vm396_vm7, %v390_v41 }
  0xc1   : > { %v1245_v45 = vld.sshfl [vmem:[#allocation1 + $0x10] sm:$0xff pattern:$0x75316420] }
  0xc2   : > { %431 = vst [vmem:[#allocation1 + $0x10] ss:$2 sm:$0xff] %v426_v46 }
  0xc3   : > { %v433_v47 = vld.sshfl [vmem:[#allocation1 + $0x8] sm:$0xff pattern:$0x75316420]  ;;  %v432_v48 = vld.sshfl [vmem:[#allocation1] sm:$0xff pattern:$0x75316420] }
  0xc4   : > { %437 = vrot.lane.b32.xlu0 %v433_v47, %s1158_s20  ;;  %435 = vrot.lane.b32.xlu2 %v432_v48, %s1158_s20  ;;  %455 = vst [vmem:[#allocation1 + $0x1] ss:$2 sm:$0xff] %v1237_v37 }
  0xc9   : > { %v434_v49 = vld.sshfl [vmem:[#allocation1 + $0x10] sm:$0xff pattern:$0x75316420] }
  0xca   : > { %457 = vst [vmem:[#allocation1 + $0x11] ss:$2 sm:$0xff] %v451_v50 }
  0xcb   : > { %v459_v51 = vld.sshfl [vmem:[#allocation1 + $0x8] sm:$0xff pattern:$0x75316420]  ;;  %v458_v52 = vld.sshfl [vmem:[#allocation1] sm:$0xff pattern:$0x75316420] }
  0xcc   : > { %463 = vrot.lane.b32.xlu2 %v459_v51, %s1159_s23  ;;  %461 = vrot.lane.b32.xlu1 %v458_v52, %s1159_s23  ;;  %480 = vst [vmem:[#allocation1] ss:$2 sm:$0xff] %v1237_v37 }
  0xd1   : > { %v460_v54 = vld.sshfl [vmem:[#allocation1 + $0x10] sm:$0xff pattern:$0x75316420] }
  0xd2   : > { %482 = vst [vmem:[#allocation1 + $0x10] ss:$2 sm:$0xff] %v477_v53 }
  0xd3   : > { %v484_v55 = vld.sshfl [vmem:[#allocation1 + $0x8] sm:$0xff pattern:$0x75316420]  ;;  %v483_v56 = vld.sshfl [vmem:[#allocation1] sm:$0xff pattern:$0x75316420] }
  0xd4   : > { %488 = vrot.lane.b32.xlu2 %v484_v55, %s1160_s24  ;;  %486 = vrot.lane.b32.xlu1 %v483_v56, %s1160_s24  ;;  %506 = vst [vmem:[#allocation1 + $0x1] ss:$2 sm:$0xff] %v1237_v37  ;;  %v603_v55 = vld [vmem:[%s1428_s1] sm:$0xff] }
  0xd9   : > { %v485_v58 = vld.sshfl [vmem:[#allocation1 + $0x10] sm:$0xff pattern:$0x75316420] }
  0xda   : > { %508 = vst [vmem:[#allocation1 + $0x11] ss:$2 sm:$0xff] %v502_v57 }
  0xdb   : > { %v510_v59 = vld.sshfl [vmem:[#allocation1 + $0x8] sm:$0xff pattern:$0x75316420]  ;;  %v509_v60 = vld.sshfl [vmem:[#allocation1] sm:$0xff pattern:$0x75316420] }
  0xdc   : > { %514 = vrot.lane.b32.xlu1 %v510_v59, %s1161_s25  ;;  %512 = vrot.lane.b32.xlu0 %v509_v60, %s1161_s25  ;;  %531 = vst [vmem:[#allocation1] ss:$2 sm:$0xff] %v1237_v37 }
  0xe1   : > { %v511_v62 = vld.sshfl [vmem:[#allocation1 + $0x10] sm:$0xff pattern:$0x75316420] }
  0xe2   : > { %533 = vst [vmem:[#allocation1 + $0x10] ss:$2 sm:$0xff] %v528_v61 }
  0xe3   : > { %v535_v63 = vld.sshfl [vmem:[#allocation1 + $0x8] sm:$0xff pattern:$0x75316420]  ;;  %v534_v0 = vld.sshfl [vmem:[#allocation1] sm:$0xff pattern:$0x75316420] }
  0xe4   : > { %539 = vrot.lane.b32.xlu1 %v535_v63, %s1162_s26  ;;  %537 = vrot.lane.b32.xlu0 %v534_v0, %s1162_s26  ;;  %557 = vst [vmem:[#allocation1 + $0x1] ss:$2 sm:$0xff] %v1237_v37 }
  0xe9   : > { %v536_v2 = vld.sshfl [vmem:[#allocation1 + $0x10] sm:$0xff pattern:$0x75316420] }
  0xea   : > { %559 = vst [vmem:[#allocation1 + $0x11] ss:$2 sm:$0xff] %v553_v1 }
  0xeb   : > { %v561_v3 = vld.sshfl [vmem:[#allocation1 + $0x8] sm:$0xff pattern:$0x75316420]  ;;  %v560_v4 = vld.sshfl [vmem:[#allocation1] sm:$0xff pattern:$0x75316420] }
  0xec   : > { %563 = vrot.lane.b32.xlu2 %v560_v4, %s1163_s28  ;;  %582 = vst [vmem:[#allocation1] ss:$2 sm:$0xff] %v1237_v37  ;;  %541 = vrot.lane.b32.xlu0 %v536_v2, %s1162_s26  ;;  %v619_v37 = vld [vmem:[%s1429_s2] sm:$0xff] }
  0xf1   : > { %v562_v7 = vld.sshfl [vmem:[#allocation1 + $0x10] sm:$0xff pattern:$0x75316420] }
  0xf2   : > { %584 = vst [vmem:[#allocation1 + $0x10] ss:$2 sm:$0xff] %v579_v5 }
  0xf3   : > { %v585_v8 = vld.sshfl [vmem:[#allocation1] sm:$0xff pattern:$0x75316420]  ;;  %v586_v9 = vld.sshfl [vmem:[#allocation1 + $0x8] sm:$0xff pattern:$0x75316420] }
  0xf4   : > { %588 = vrot.lane.b32.xlu1 %v585_v8, %s1164_s29  ;;  %490 = vrot.lane.b32.xlu2 %v485_v58, %s1160_s24 }
  0xf5   : > { %565 = vrot.lane.b32.xlu0 %v561_v3, %s1163_s28 }
  0xf9   : > { %v587_v10 = vld.sshfl [vmem:[#allocation1 + $0x10] sm:$0xff pattern:$0x75316420] }
  0xfc   : > { %590 = vrot.lane.b32.xlu2 %v586_v9, %s1164_s29  ;;  %567 = vrot.lane.b32.xlu1 %v562_v7, %s1163_s28  ;;  %v708_v7 = vld [vmem:[%s1432_s5] sm:$0x7] }
  0xfd   : > { %516 = vrot.lane.b32.xlu0 %v511_v62, %s1161_s25 }
 0x104   : > { %439 = vrot.lane.b32.xlu1 %v434_v49, %s1158_s20  ;;  %592 = vrot.lane.b32.xlu2 %v587_v10, %s1164_s29  ;;  %v710_v10 = vperm.slane %v708_v7, 0 }
 0x105   : > { %413 = vrot.lane.b32.xlu0 %v1245_v45, %s1157_s19 }
 0x10c   : > { %465 = vrot.lane.b32.xlu2 %v460_v54, %s1159_s23  ;;  %622 = vperm.xlu1 %1129, %v619_v37  }
 0x11e   : > { %v436_v11 = vpop.permute.xlu2 %435 }
 0x126   : > { %v464_v15 = vpop.permute.xlu2 %463 }
 0x12e   : > { %v1276_v12 = vpop.permute.xlu1 %411  ;;  %v410_v13 = vpop.permute.xlu0 %409 }
 0x12f   : > { %v416_v14 = vsel %vm415_vm8, %v410_v13, %v1276_v12  ;;  %v489_v18 = vpop.permute.xlu2 %488 }
 0x130   : > { %421 = vst [vmem:[#allocation4] sm:$0xf0] %v416_v14 }
 0x136   : > { %v1280_v16 = vpop.permute.xlu0 %437 }
 0x137   : > { %v442_v17 = vsel %vm441_vm9, %v436_v11, %v1280_v16  ;;  %v604_v58 = vld [vmem:[#allocation4] sm:$0xff] }
 0x138   : > { %447 = vst [vmem:[#allocation4 + $0x18] sm:$0xf] %v442_v17 }
 0x13e   : > { %v462_v19 = vpop.permute.xlu1 %461 }
 0x13f   : > { %v468_v20 = vsel %vm467_vm10, %v462_v19, %v464_v15 }
 0x140   : > { %473 = vst [vmem:[#allocation4 + $0x18] sm:$0xf0] %v468_v20 }
 0x146   : > { %v487_v21 = vpop.permute.xlu1 %486  ;;  %v564_v22 = vpop.permute.xlu2 %563 }
 0x147   : > { %v493_v23 = vsel %vm492_vm11, %v487_v21, %v489_v18  ;;  %v607_v53 = vld [vmem:[#allocation4 + $0x18] sm:$0xff] }
 0x148   : > { %498 = vst [vmem:[#allocation4 + $0x30] sm:$0xf] %v493_v23 }
 0x14e   : > { %v515_v24 = vpop.permute.xlu1 %514  ;;  %v491_v25 = vpop.permute.xlu2 %490 }
 0x14f   : > { %v494_v26 = vsel %vm492_vm11, %v489_v18, %v491_v25  ;;  %500 = vst.msk [vmem:[#allocation4 + $0x40] sm:$0xf] %vm396_vm7, %v491_v25  ;;  %v513_v27 = vpop.permute.xlu0 %512 }
 0x150   : > { %499 = vst [vmem:[#allocation4 + $0x38] sm:$0xf] %v494_v26  ;;  %v519_v28 = vsel %vm518_vm12, %v513_v27, %v515_v24 }
 0x151   : > { %524 = vst [vmem:[#allocation4 + $0x30] sm:$0xf0] %v519_v28 }
 0x156   : > { %v540_v29 = vpop.permute.xlu1 %539  ;;  %v591_v30 = vpop.permute.xlu2 %590 }
 0x157   : > { %v538_v31 = vpop.permute.xlu0 %537 }
 0x158   : > { %v544_v32 = vsel %vm543_vm13, %v538_v31, %v540_v29  ;;  %v610_v52 = vld [vmem:[#allocation4 + $0x30] sm:$0xff] }
 0x159   : > { %549 = vst [vmem:[#allocation4 + $0x48] sm:$0xf] %v544_v32 }
 0x15e   : > { %v593_v33 = vpop.permute.xlu2 %592 }
 0x15f   : > { %v596_v34 = vsel %vm594_vm14, %v591_v30, %v593_v33  ;;  %602 = vst.msk [vmem:[#allocation4 + $0x70] sm:$0xf] %vm396_vm7, %v593_v33  ;;  %v542_v35 = vpop.permute.xlu0 %541 }
 0x160   : > { %601 = vst [vmem:[#allocation4 + $0x68] sm:$0xf] %v596_v34  ;;  %v545_v36 = vsel %vm543_vm13, %v540_v29, %v542_v35 }
 0x161   : > { %550 = vst [vmem:[#allocation4 + $0x50] sm:$0xf] %v545_v36 }
 0x162   : > { %551 = vst.msk [vmem:[#allocation4 + $0x58] sm:$0xf] %vm396_vm7, %v542_v35 }
 0x166   : > { %v589_v39 = vpop.permute.xlu1 %588  ;;  %v466_v40 = vpop.permute.xlu2 %465  ;;  %v618_v61 = vld [vmem:[#allocation4 + $0x70] sm:$0xf] }
 0x167   : > { %v595_v41 = vsel %vm594_vm14, %v589_v39, %v591_v30  ;;  %v469_v42 = vsel %vm467_vm10, %v464_v15, %v466_v40  ;;  %475 = vst.msk [vmem:[#allocation4 + $0x28] sm:$0xf0] %vm423_vm15, %v466_v40  ;;  %v566_v43 = vpop.permute.xlu0 %565  ;;  %v617_v44 = vld [vmem:[#allocation4 + $0x68] sm:$0xf] }
 0x168   : > { %600 = vst [vmem:[#allocation4 + $0x60] sm:$0xf] %v595_v41  ;;  %v570_v45 = vsel %vm569_vm0, %v564_v22, %v566_v43  ;;  %1084 = vmatpush.msk.msra.mxu1 %vm629_vm1, %v617_v44  ;;  %v712_v22 = vperm.slane %v708_v7, 2 }
 0x169   : > { %474 = vst [vmem:[#allocation4 + $0x20] sm:$0xf0] %v469_v42 }
 0x16a   : > { %575 = vst [vmem:[#allocation4 + $0x48] sm:$0xf0] %v570_v45 }
 0x16e   : > { %v568_v46 = vpop.permute.xlu1 %567 }
 0x16f   : > { %v571_v47 = vsel %vm569_vm0, %v566_v43, %v568_v46  ;;  %577 = vst.msk [vmem:[#allocation4 + $0x58] sm:$0xf0] %vm423_vm15, %v568_v46  ;;  %v517_v48 = vpop.permute.xlu0 %516  ;;  %v616_v49 = vld [vmem:[#allocation4 + $0x60] sm:$0xf] }
 0x170   : > { %576 = vst [vmem:[#allocation4 + $0x50] sm:$0xf0] %v571_v47  ;;  %v520_v50 = vsel %vm518_vm12, %v515_v24, %v517_v48  ;;  %1082 = vmatpush.msk.msra.mxu2 %vm629_vm1, %v616_v49 }
 0x171   : > { %525 = vst [vmem:[#allocation4 + $0x38] sm:$0xf0] %v520_v50  ;;  %v613_v51 = vld [vmem:[#allocation4 + $0x48] sm:$0xff] }
 0x172   : > { %526 = vst.msk [vmem:[#allocation4 + $0x40] sm:$0xf0] %vm423_vm15, %v517_v48  ;;  %651 = vmatpush.msra.mxu2 %v613_v51 }
 0x174   : > { %652 = vmatpush.msra.mxu2 %v610_v52 }
 0x176   : > { %v440_v54 = vpop.permute.xlu1 %439  ;;  %653 = vmatpush.msra.mxu2 %v607_v53  ;;  %v615_v63 = vld [vmem:[#allocation4 + $0x58] sm:$0xff] }
 0x177   : > { %v443_v56 = vsel %vm441_vm9, %v1280_v16, %v440_v54  ;;  %449 = vst.msk [vmem:[#allocation4 + $0x28] sm:$0xf] %vm396_vm7, %v440_v54  ;;  %v414_v57 = vpop.permute.xlu0 %413  ;;  %v614_v59 = vld [vmem:[#allocation4 + $0x50] sm:$0xff]  ;;  %v711_v16 = vperm.slane %v708_v7, 1  ;;  %vm257_vm7 = vcmask 572416  }
 0x178   : > { %448 = vst [vmem:[#allocation4 + $0x20] sm:$0xf] %v443_v56  ;;  %v417_v60 = vsel %vm415_vm8, %v1276_v12, %v414_v57  ;;  %654 = vmatpush.msra.mxu2 %v604_v58  ;;  %671 = vmatpush.msra.mxu1 %v614_v59  ;;  %v611_v62 = vld [vmem:[#allocation4 + $0x38] sm:$0xff] }
 0x179   : > { %422 = vst [vmem:[#allocation4 + $0x8] sm:$0xf0] %v417_v60  ;;  %1083 = vmatmul.msk.f32.vlgmr.msra.gmra.mxu2 %vm625_vm2, %v603_v55  ;;  %v612_v0 = vld [vmem:[#allocation4 + $0x40] sm:$0xff]  ;;  %v906_v7 = vld [vmem:[%s1430_s3] sm:$0xff] }
 0x17a   : > { %424 = vst.msk [vmem:[#allocation4 + $0x10] sm:$0xf0] %vm423_vm15, %v414_v57  ;;  %1086 = vmatpush.msk.msrb.mxu2 %vm629_vm1, %v618_v61  ;;  %672 = vmatpush.msra.mxu1 %v611_v62  ;;  %vm728_vm15 = vcmask 154624   ;;  %vm737_vm1 = vcmask 416768  }
 0x17b   : > { %258 = vst.msk [vmem:[#allocation3 + $0x10] sm:$0xff] %vm257_vm7, %v1145_v6 }
 0x17c   : > { %691 = vmatpush.msrb.mxu2 %v615_v63 }
 0x17e   : > { %692 = vmatpush.msrb.mxu2 %v612_v0  ;;  %v609_v1 = vld [vmem:[#allocation4 + $0x28] sm:$0xff]  ;;  %v623_v5 = vpop.permute.xlu1 %622  ;;  %v934_v0 = vld [vmem:[%s1431_s4] sm:$0xff] }
 0x17f   : > { %v608_v2 = vld [vmem:[#allocation4 + $0x20] sm:$0xff] }
 0x180   : > { %693 = vmatpush.msrb.mxu2 %v609_v1  ;;  %673 = vmatpush.msra.mxu1 %v608_v2  ;;  %v605_v4 = vld [vmem:[#allocation4 + $0x8] sm:$0xff] }
 0x181   : > { %v606_v3 = vld [vmem:[#allocation4 + $0x10] sm:$0xff] }
 0x182   : > { %694 = vmatpush.msrb.mxu2 %v606_v3  ;;  %674 = vmatpush.msra.mxu1 %v605_v4 }
 0x183   : > { %1087 = vmatmul.msk.f32.vlgmr.msrb.gmra.mxu2 %vm625_vm2, %v603_v55  ;;  %1085 = vmatmul.msk.f32.vlgmr.msra.gmra.mxu1 %vm625_vm2, %v603_v55  ;;  %vm744_vm2 = vcmask 261120  }
 0x1fc   : > { %v656_v8 = vpop.f32.mrf.mxu2 }
 0x1fd   : > { %v657_v9 = vadd.f32 %v656_v8, %v623_v5 }
 0x1ff   : > { %vm699_vm3 = vcmp.gt.f32.partialorder %v657_v9, 0.0  ;;  %v702_v11 = vmul.f32 0.01, %v657_v9 }
 0x200   : > { %v676_v12 = vpop.f32.mrf.mxu1 }
 0x201   : > { %v677_v13 = vadd.f32 %v676_v12, %v623_v5  ;;  %v1323_v14 = vsel %vm699_vm3, %v657_v9, %v702_v11 }
 0x202   : > { %v716_v15 = vmul.f32 %v710_v10, %v1323_v14 }
 0x203   : > { %vm700_vm4 = vcmp.gt.f32.partialorder %v677_v13, 0.0  ;;  %v703_v17 = vmul.f32 0.01, %v677_v13 }
 0x204   : > { %722 = vrot.lane.b32.xlu2 %v716_v15, %s1140_s27 }
 0x205   : > { %v1327_v18 = vsel %vm700_vm4, %v677_v13, %v703_v17 }
 0x206   : > { %v696_v19 = vpop.f32.mrf.mxu2  ;;  %v717_v20 = vmul.f32 %v711_v16, %v1327_v18 }
 0x207   : > { %v697_v21 = vadd.f32 %v696_v19, %v623_v5 }
 0x208   : > { %724 = vrot.lane.b32.xlu0 %v717_v20, %s1140_s27 }
 0x209   : > { %vm701_vm5 = vcmp.gt.f32.partialorder %v697_v21, 0.0  ;;  %v704_v23 = vmul.f32 0.01, %v697_v21 }
 0x20b   : > { %v1331_v24 = vsel %vm701_vm5, %v697_v21, %v704_v23 }
 0x20c   : > { %v718_v25 = vmul.f32 %v712_v22, %v1331_v24 }
 0x20e   : > { %726 = vrot.lane.b32.xlu1 %v718_v25, %s1140_s27 }
 0x25e   : > { %v723_v26 = vpop.permute.xlu2 %722 }
 0x25f   : > { %735 = vst.msk [vmem:[#allocation3] sm:$0xff] %vm734_vm6, %v723_v26 }
 0x266   : > { %v1336_v27 = vld [vmem:[#allocation3] sm:$0xff] }
 0x267   : > { %892 = vrot.lane.b32.xlu2 %v1336_v27, %s1164_s29  ;;  %872 = vrot.lane.b32.xlu1 %v1336_v27, %s1163_s28 }
 0x268   : > { %852 = vrot.lane.b32.xlu0 %v1336_v27, %s1162_s26 }
 0x26f   : > { %832 = vrot.lane.b32.xlu2 %v1336_v27, %s1161_s25 }
 0x277   : > { %812 = vrot.lane.b32.xlu2 %v1336_v27, %s1160_s24 }
 0x27a   : > { %v725_v28 = vpop.permute.xlu0 %724 }
 0x27b   : > { %v1348_v6 = vsel %vm728_vm15, %v723_v26, %v725_v28 }
 0x27c   : > { %894 = vrot.lane.b32.xlu0 %v1348_v6, %s1164_s29  ;;  %854 = vrot.lane.b32.xlu1 %v1348_v6, %s1162_s26 }
 0x27f   : > { %792 = vrot.lane.b32.xlu2 %v1336_v27, %s1159_s23 }
 0x280   : > { %v727_v29 = vpop.permute.xlu1 %726 }
 0x281   : > { %v730_v30 = vsel %vm728_vm15, %v725_v28, %v727_v29 }
 0x282   : > { %738 = vst.msk [vmem:[#allocation3 + $0x10] sm:$0xff] %vm737_vm1, %v730_v30 }
 0x284   : > { %834 = vrot.lane.b32.xlu0 %v1348_v6, %s1161_s25 }
 0x287   : > { %772 = vrot.lane.b32.xlu2 %v1336_v27, %s1158_s20 }
 0x289   : > { %v888_v31 = vld [vmem:[#allocation3 + $0x10] sm:$0xff] }
 0x28a   : > { %896 = vrot.lane.b32.xlu1 %v888_v31, %s1164_s29  ;;  %745 = vst.msk [vmem:[#allocation5 + $0x10] sm:$0xff] %vm744_vm2, %v888_v31 }
 0x28c   : > { %814 = vrot.lane.b32.xlu0 %v1348_v6, %s1160_s24 }
 0x28f   : > { %874 = vrot.lane.b32.xlu2 %v1348_v6, %s1163_s28 }
 0x291   : > { %v909_v21 = vld [vmem:[#allocation5 + $0x10] sm:$0xff] }
 0x292   : > { %876 = vrot.lane.b32.xlu1 %v888_v31, %s1163_s28 }
 0x294   : > { %794 = vrot.lane.b32.xlu0 %v1348_v6, %s1159_s23 }
 0x297   : > { %752 = vrot.lane.b32.xlu2 %v1336_v27, %s1157_s19 }
 0x29a   : > { %856 = vrot.lane.b32.xlu1 %v888_v31, %s1162_s26 }
 0x29c   : > { %774 = vrot.lane.b32.xlu0 %v1348_v6, %s1158_s20 }
 0x29f   : > { %796 = vrot.lane.b32.xlu2 %v888_v31, %s1159_s23 }
 0x2a2   : > { %836 = vrot.lane.b32.xlu1 %v888_v31, %s1161_s25 }
 0x2a4   : > { %754 = vrot.lane.b32.xlu0 %v1348_v6, %s1157_s19 }
 0x2a7   : > { %937 = vperm.xlu2 %1130, %v934_v0  }
 0x2aa   : > { %816 = vrot.lane.b32.xlu1 %v888_v31, %s1160_s24 }
 0x2ac   : > { %776 = vrot.lane.b32.xlu0 %v888_v31, %s1158_s20 }
 0x2b2   : > { %756 = vrot.lane.b32.xlu1 %v888_v31, %s1157_s19 }
 0x2c1   : > { %v893_v32 = vpop.permute.xlu2 %892 }
 0x2c9   : > { %v833_v33 = vpop.permute.xlu2 %832 }
 0x2d1   : > { %v813_v34 = vpop.permute.xlu2 %812 }
 0x2d9   : > { %v793_v35 = vpop.permute.xlu2 %792  ;;  %v873_v37 = vpop.permute.xlu1 %872 }
 0x2da   : > { %v853_v38 = vpop.permute.xlu0 %852 }
 0x2e1   : > { %v773_v36 = vpop.permute.xlu2 %772 }
 0x2e9   : > { %v875_v39 = vpop.permute.xlu2 %874 }
 0x2ea   : > { %v878_v40 = vsel %vm569_vm0, %v873_v37, %v875_v39 }
 0x2ee   : > { %v855_v41 = vpop.permute.xlu1 %854  ;;  %v895_v42 = vpop.permute.xlu0 %894 }
 0x2ef   : > { %v858_v43 = vsel %vm543_vm13, %v853_v38, %v855_v41  ;;  %v898_v44 = vsel %vm594_vm14, %v893_v32, %v895_v42 }
 0x2f0   : > { %951 = vmatpush.msra.mxu3 %v898_v44 }
 0x2f1   : > { %v753_v45 = vpop.permute.xlu2 %752 }
 0x2f2   : > { %952 = vmatpush.msra.mxu3 %v878_v40 }
 0x2f4   : > { %953 = vmatpush.msra.mxu3 %v858_v43 }
 0x2f6   : > { %v835_v46 = vpop.permute.xlu0 %834 }
 0x2f7   : > { %v838_v47 = vsel %vm518_vm12, %v833_v33, %v835_v46 }
 0x2f8   : > { %954 = vmatpush.msra.mxu3 %v838_v47 }
 0x2f9   : > { %v797_v48 = vpop.permute.xlu2 %796 }
 0x2fa   : > { %805 = vst.msk [vmem:[#allocation5 + $0x58] sm:$0xff] %vm744_vm2, %v797_v48 }
 0x2fc   : > { %v897_v49 = vpop.permute.xlu1 %896 }
 0x2fd   : > { %v899_v50 = vsel %vm594_vm14, %v895_v42, %v897_v49  ;;  %905 = vst.msk [vmem:[#allocation5 + $0xd0] sm:$0xff] %vm744_vm2, %v897_v49 }
 0x2fe   : > { %v815_v51 = vpop.permute.xlu0 %814  ;;  %971 = vmatpush.msra.mxu0 %v899_v50 }
 0x2ff   : > { %v818_v52 = vsel %vm492_vm11, %v813_v34, %v815_v51 }
 0x300   : > { %955 = vmatpush.msra.mxu3 %v818_v52 }
 0x301   : > { %v918_v17 = vld [vmem:[#allocation5 + $0x58] sm:$0xff]  ;;  %v938_v22 = vpop.permute.xlu2 %937 }
 0x304   : > { %v877_v53 = vpop.permute.xlu1 %876  ;;  %v933_v54 = vld [vmem:[#allocation5 + $0xd0] sm:$0xff] }
 0x305   : > { %v879_v55 = vsel %vm569_vm0, %v875_v39, %v877_v53  ;;  %885 = vst.msk [vmem:[#allocation5 + $0xb8] sm:$0xff] %vm744_vm2, %v877_v53  ;;  %991 = vmatpush.msrb.mxu1 %v933_v54 }
 0x306   : > { %v795_v56 = vpop.permute.xlu0 %794  ;;  %972 = vmatpush.msra.mxu0 %v879_v55 }
 0x307   : > { %v798_v57 = vsel %vm467_vm10, %v793_v35, %v795_v56  ;;  %v799_v58 = vsel %vm467_vm10, %v795_v56, %v797_v48  ;;  %vm940_vm10 = vcmask 588800  }
 0x308   : > { %956 = vmatpush.msra.mxu3 %v798_v57 }
 0x30c   : > { %v857_v59 = vpop.permute.xlu1 %856  ;;  %v930_v60 = vld [vmem:[#allocation5 + $0xb8] sm:$0xff] }
 0x30d   : > { %v859_v61 = vsel %vm543_vm13, %v855_v41, %v857_v59  ;;  %865 = vst.msk [vmem:[#allocation5 + $0xa0] sm:$0xff] %vm744_vm2, %v857_v59  ;;  %992 = vmatpush.msrb.mxu1 %v930_v60 }
 0x30e   : > { %v775_v62 = vpop.permute.xlu0 %774  ;;  %973 = vmatpush.msra.mxu0 %v859_v61 }
 0x30f   : > { %v778_v63 = vsel %vm441_vm9, %v773_v36, %v775_v62 }
 0x310   : > { %957 = vmatpush.msra.mxu3 %v778_v63 }
 0x314   : > { %v837_v1 = vpop.permute.xlu1 %836  ;;  %v927_v2 = vld [vmem:[#allocation5 + $0xa0] sm:$0xff] }
 0x315   : > { %v839_v3 = vsel %vm518_vm12, %v835_v46, %v837_v1  ;;  %845 = vst.msk [vmem:[#allocation5 + $0x88] sm:$0xff] %vm744_vm2, %v837_v1  ;;  %993 = vmatpush.msrb.mxu1 %v927_v2 }
 0x316   : > { %v755_v4 = vpop.permute.xlu0 %754  ;;  %974 = vmatpush.msra.mxu0 %v839_v3 }
 0x317   : > { %v758_v5 = vsel %vm415_vm8, %v753_v45, %v755_v4 }
 0x318   : > { %958 = vmatpush.msra.mxu3 %v758_v5 }
 0x31a   : > { %959 = vmatpush.msra.mxu3 %v1336_v27 }
 0x31b   : > { %1088 = vmatmul.msk.f32.vlgmr.msra.gmra.mxu3 %vm940_vm10, %v906_v7 }
 0x31c   : > { %v817_v8 = vpop.permute.xlu1 %816  ;;  %v924_v9 = vld [vmem:[#allocation5 + $0x88] sm:$0xff] }
 0x31d   : > { %v819_v10 = vsel %vm492_vm11, %v815_v51, %v817_v8  ;;  %825 = vst.msk [vmem:[#allocation5 + $0x70] sm:$0xff] %vm744_vm2, %v817_v8  ;;  %994 = vmatpush.msrb.mxu1 %v924_v9 }
 0x31e   : > { %v777_v11 = vpop.permute.xlu0 %776  ;;  %975 = vmatpush.msra.mxu0 %v819_v10 }
 0x31f   : > { %v779_v12 = vsel %vm441_vm9, %v775_v62, %v777_v11  ;;  %785 = vst.msk [vmem:[#allocation5 + $0x40] sm:$0xff] %vm744_vm2, %v777_v11 }
 0x320   : > { %976 = vmatpush.msra.mxu0 %v799_v58 }
 0x322   : > { %977 = vmatpush.msra.mxu0 %v779_v12 }
 0x324   : > { %v757_v13 = vpop.permute.xlu1 %756  ;;  %v921_v15 = vld [vmem:[#allocation5 + $0x70] sm:$0xff] }
 0x325   : > { %v759_v16 = vsel %vm415_vm8, %v755_v4, %v757_v13  ;;  %765 = vst.msk [vmem:[#allocation5 + $0x28] sm:$0xff] %vm744_vm2, %v757_v13  ;;  %995 = vmatpush.msrb.mxu1 %v921_v15 }
 0x326   : > { %v915_v19 = vld [vmem:[#allocation5 + $0x40] sm:$0xff]  ;;  %978 = vmatpush.msra.mxu0 %v759_v16 }
 0x327   : > { %996 = vmatpush.msrb.mxu1 %v918_v17 }
 0x328   : > { %979 = vmatpush.msra.mxu0 %v1348_v6 }
 0x329   : > { %997 = vmatpush.msrb.mxu1 %v915_v19  ;;  %1089 = vmatmul.msk.f32.vlgmr.msra.gmra.mxu0 %vm940_vm10, %v906_v7 }
 0x32c   : > { %v912_v20 = vld [vmem:[#allocation5 + $0x28] sm:$0xff] }
 0x32d   : > { %998 = vmatpush.msrb.mxu1 %v912_v20 }
 0x32f   : > { %999 = vmatpush.msrb.mxu1 %v909_v21 }
 0x330   : > { %1090 = vmatmul.msk.f32.vlgmr.msrb.gmra.mxu1 %vm940_vm10, %v906_v7 }
 0x39e   : > { %v961_v23 = vpop.f32.mrf.mxu3 }
 0x39f   : > { %v962_v25 = vadd.f32 %v961_v23, %v938_v22 }
 0x3a1   : > { %vm1004_vm8 = vcmp.gt.f32.partialorder %v962_v25, 0.0  ;;  %v1007_v26 = vmul.f32 0.01, %v962_v25 }
 0x3a3   : > { %v1010_v27 = vsel %vm1004_vm8, %v962_v25, %v1007_v26 }
 0x3a4   : > { %v1013_v28 = vadd.f32 %v1010_v27, %v1323_v14 }
 0x3a6   : > { %1016 = vst [vmem:[%s251_s18] sm:$0xff] %v1013_v28  ;;  %v981_v6 = vpop.f32.mrf.mxu0 }
 0x3a7   : > { %v982_v29 = vadd.f32 %v981_v6, %v938_v22 }
 0x3a9   : > { %vm1005_vm9 = vcmp.gt.f32.partialorder %v982_v29, 0.0  ;;  %v1008_v30 = vmul.f32 0.01, %v982_v29 }
 0x3ab   : > { %v1011_v31 = vsel %vm1005_vm9, %v982_v29, %v1008_v30 }
 0x3ac   : > { %v1014_v32 = vadd.f32 %v1011_v31, %v1327_v18 }
 0x3ad   : > { %v1001_v33 = vpop.f32.mrf.mxu1 }
 0x3ae   : > { %v1002_v34 = vadd.f32 %v1001_v33, %v938_v22  ;;  %1017 = vst [vmem:[%s251_s18 + $0x8] sm:$0xff] %v1014_v32 }
 0x3b0   : > { %vm1006_vm11 = vcmp.gt.f32.partialorder %v1002_v34, 0.0  ;;  %v1009_v35 = vmul.f32 0.01, %v1002_v34 }
 0x3b2   : > { %v1012_v36 = vsel %vm1006_vm11, %v1002_v34, %v1009_v35 }
 0x3b3   : > { %v1015_v37 = vadd.f32 %v1012_v36, %v1331_v24 }
 0x3b5   : > { %1018 = vst.msk [vmem:[%s251_s18 + $0x10] sm:$0xff] %vm744_vm2, %v1015_v37 }
 0x3b6 PF: > { %s16_s21 = sadd.s32 1, %s1138_s21  }
 0x3b7   : > { %p13_p4 = scmp.ge.s32.totalorder %s16_s21, 4  }
 0x3b9   :  { %15 = sbr.rel (!%p13_p4) target bundleno = 1 (0x1), region = 87 }

</bundles_post_ra>
